<compile_context>
chip_gen: v7x
topology: tpu7x:2x2x1
jax: 0.10.0
libtpu: 0.0.40
codegen_flags: <defaults>
</compile_context>

<pallas_src>
import functools

import jax
import jax.numpy as jnp
from jax.experimental import pallas as pl
from jax.experimental.pallas import tpu as pltpu


def _pow_int(x, n):
    """x ** n for non-negative integer n via repeated multiply (VALU only)."""
    result = None
    base = x
    while n > 0:
        if n & 1:
            result = base if result is None else result * base
        base = base * base
        n >>= 1
    return jnp.ones_like(x) if result is None else result


def _focal_v2_kernel(x_ref, t_ref, out_ref, *, gamma, rows_per_tile, lanes):
    x = x_ref[...].astype(jnp.float32)
    t = t_ref[...].astype(jnp.float32)

    # One shared exp(-|x|) feeds both log-sigmoid and (1 - sigmoid).
    z = jnp.exp(-jnp.abs(x))                       # EUP exp (x1)
    log1pz = jnp.log1p(z)                          # EUP log (x1)
    logsig = jnp.minimum(x, 0.0) - log1pz          # log(sigmoid(x)), stable
    inv = 1.0 / (1.0 + z)                          # EUP recip (x1)
    one_minus_sig = jnp.where(x >= 0.0, z * inv, inv)   # == sigmoid(-x) = 1 - sigmoid(x)

    if isinstance(gamma, int) and gamma >= 0:
        weight = _pow_int(one_minus_sig, gamma)    # pure multiplies for int gamma
    else:
        # TODO(synk): float gamma falls back to pow (log+exp on the EUP).
        weight = one_minus_sig ** gamma

    # Padded elements carry t == 0 and therefore contribute exactly 0.
    term = weight * logsig * t

    # Per-block partial sums folded into an (8, lanes) vreg-aligned slab;
    # the tiny global reduce happens outside the kernel.
    part = jnp.sum(term.reshape(rows_per_tile // 8, 8, lanes), axis=0, keepdims=True)
    out_ref[...] = part


def focal_loss_v2(y_pred, y_true, gamma=2, *, lanes=512, block_bytes=4 << 20):
    """y_pred: logits [N, C, ...], y_true: targets (same shape). Scalar f32 loss."""
    assert y_pred.shape == y_true.shape and y_pred.ndim >= 2
    assert lanes % 128 == 0
    total = y_pred.size
    # torch: sum over dim=1, then mean over everything that remains.
    denom = total // y_pred.shape[1]

    # Flatten to a lane-dense [rows, lanes] layout; the loss is a pure
    # elementwise-product sum, so the original layout is irrelevant.
    x = y_pred.reshape(-1)
    t = y_true.reshape(-1)

    rows = pl.cdiv(total, lanes)
    itemsize = x.dtype.itemsize + t.dtype.itemsize
    # Largest row tile (multiple of 8) whose per-input block stays under budget.
    budget_rows = max(
        8, (block_bytes // (lanes * max(x.dtype.itemsize, t.dtype.itemsize))) // 8 * 8
    )
    tile_rows = min(budget_rows, ((rows + 7) // 8) * 8)
    rows_pad = ((rows + tile_rows - 1) // tile_rows) * tile_rows
    grid = rows_pad // tile_rows

    pad = rows_pad * lanes - total
    if pad:
        # Zero-padded targets -> padded elements contribute exactly 0 to the sum.
        x = jnp.concatenate([x, jnp.zeros((pad,), x.dtype)])
        t = jnp.concatenate([t, jnp.zeros((pad,), t.dtype)])
    x = x.reshape(rows_pad, lanes)
    t = t.reshape(rows_pad, lanes)

    in_block_bytes = tile_rows * lanes * itemsize
    # 2 pipeline buffers over both input blocks + headroom; safe on v5e/v6e/v7x.
    vmem_limit = int(max(32 << 20, 2 * in_block_bytes + (8 << 20)))

    kernel = functools.partial(
        _focal_v2_kernel, gamma=gamma, rows_per_tile=tile_rows, lanes=lanes
    )

    partials = pl.pallas_call(
        kernel,
        out_shape=jax.ShapeDtypeStruct((grid, 8, lanes), jnp.float32),
        grid_spec=pltpu.PrefetchScalarGridSpec(
            num_scalar_prefetch=0,
            grid=(grid,),
            in_specs=[
                pl.BlockSpec((tile_rows, lanes), lambda i: (i, 0)),
                pl.BlockSpec((tile_rows, lanes), lambda i: (i, 0)),
            ],
            out_specs=pl.BlockSpec((1, 8, lanes), lambda i: (i, 0, 0)),
        ),
        compiler_params=pltpu.CompilerParams(
            dimension_semantics=("parallel",),   # independent blocks -> megacore OK
            vmem_limit_bytes=vmem_limit,
        ),
    )(x, t)

    return -jnp.sum(partials, dtype=jnp.float32) / jnp.float32(denom)


def focal_loss_v2_ref(y_pred, y_true, gamma=2):
    x = y_pred.astype(jnp.float32)
    t = y_true.astype(jnp.float32)
    logsig = jax.nn.log_sigmoid(x)
    weight = (1.0 - jax.nn.sigmoid(x)) ** gamma
    logpy = jnp.sum(weight * logsig * t, axis=1)
    return -jnp.mean(logpy)


if __name__ == "__main__":
    N, D = 16, 32  # small demo shape: [batch, classes]
    key = jax.random.PRNGKey(0)
    kx, ky = jax.random.split(key)

    y_pred = jax.random.normal(kx, (N, D), dtype=jnp.float32) * 2.0
    y_true = (jax.random.uniform(ky, (N, D)) > 0.5).astype(jnp.float32)

    loss = focal_loss_v2(y_pred, y_true, gamma=2)
    loss = jax.block_until_ready(loss)

    ref = focal_loss_v2_ref(y_pred, y_true, gamma=2)
    assert jnp.allclose(loss, ref, rtol=1e-5, atol=1e-5), (loss, ref)

    print("KERNEL_OK")
</pallas_src>

<mosaic_0001>
module attributes {stable_mosaic.version = 11 : i64} {
  func.func @_focal_v2_kernel(%arg0: i32, %arg1: memref<8x512xf32, #tpu.memory_space<vmem>>, %arg2: memref<8x512xf32, #tpu.memory_space<vmem>>, %arg3: memref<1x8x512xf32, #tpu.memory_space<vmem>>) attributes {dimension_semantics = [#tpu.dimension_semantics<parallel>], iteration_bounds = array<i64: 1>, scalar_prefetch = 0 : i64, scratch_operands = 0 : i64, tpu.core_type = #tpu.core_type<tc>, window_params = [{transform_indices = @transform_0, window_bounds = array<i64: 8, 512>}, {transform_indices = @transform_1, window_bounds = array<i64: 8, 512>}, {transform_indices = @transform_2, window_bounds = array<i64: 1, 8, 512>}]} {
    %c0 = arith.constant 0 : index
    %c0_0 = arith.constant 0 : index
    %0 = vector.load %arg1[%c0, %c0_0] : memref<8x512xf32, #tpu.memory_space<vmem>>, vector<8x512xf32>
    %c0_1 = arith.constant 0 : index
    %c0_2 = arith.constant 0 : index
    %1 = vector.load %arg2[%c0_1, %c0_2] : memref<8x512xf32, #tpu.memory_space<vmem>>, vector<8x512xf32>
    %2 = math.absf %0 : vector<8x512xf32>
    %cst = arith.constant 0.000000e+00 : f32
    %3 = vector.broadcast %cst : f32 to vector<8x512xf32>
    %4 = arith.subf %3, %2 : vector<8x512xf32>
    %5 = math.exp %4 : vector<8x512xf32>
    %6 = math.log1p %5 : vector<8x512xf32>
    %cst_3 = arith.constant 0.000000e+00 : f32
    %7 = vector.broadcast %cst_3 : f32 to vector<8x512xf32>
    %8 = arith.minimumf %0, %7 : vector<8x512xf32>
    %9 = arith.subf %8, %6 : vector<8x512xf32>
    %cst_4 = arith.constant 1.000000e+00 : f32
    %10 = vector.broadcast %cst_4 : f32 to vector<8x512xf32>
    %11 = arith.addf %10, %5 : vector<8x512xf32>
    %cst_5 = arith.constant 1.000000e+00 : f32
    %12 = vector.broadcast %cst_5 : f32 to vector<8x512xf32>
    %13 = arith.divf %12, %11 : vector<8x512xf32>
    %cst_6 = arith.constant 0.000000e+00 : f32
    %14 = vector.broadcast %cst_6 : f32 to vector<8x512xf32>
    %15 = arith.cmpf oge, %0, %14 : vector<8x512xf32>
    %16 = arith.mulf %5, %13 : vector<8x512xf32>
    %17 = arith.select %15, %16, %13 : vector<8x512xi1>, vector<8x512xf32>
    %18 = arith.mulf %17, %17 : vector<8x512xf32>
    %19 = arith.mulf %18, %9 : vector<8x512xf32>
    %20 = arith.mulf %19, %1 : vector<8x512xf32>
    %21 = vector.shape_cast %20 : vector<8x512xf32> to vector<1x8x512xf32>
    %cst_7 = arith.constant dense<0.000000e+00> : vector<8x512xf32>
    %22 = vector.multi_reduction <add>, %21, %cst_7 [0] : vector<1x8x512xf32> to vector<8x512xf32>
    %23 = vector.shape_cast %22 : vector<8x512xf32> to vector<1x8x512xf32>
    %c0_8 = arith.constant 0 : index
    %c0_9 = arith.constant 0 : index
    %c0_10 = arith.constant 0 : index
    %24 = vector.load %arg3[%c0_8, %c0_9, %c0_10] : memref<1x8x512xf32, #tpu.memory_space<vmem>>, vector<1x8x512xf32>
    tpu.vector_store %arg3[%c0_8, %c0_9, %c0_10], %23 {strides = array<i32>} : memref<1x8x512xf32, #tpu.memory_space<vmem>>, vector<1x8x512xf32>,
    return
  }
  func.func @transform_0(%arg0: i32) -> (i32, i32) {
    %c0_i32 = arith.constant 0 : i32
    %c0_i32_0 = arith.constant 0 : i32
    return %arg0, %c0_i32 : i32, i32
  }
  func.func @transform_1(%arg0: i32) -> (i32, i32) {
    %c0_i32 = arith.constant 0 : i32
    %c0_i32_0 = arith.constant 0 : i32
    return %arg0, %c0_i32 : i32, i32
  }
  func.func @transform_2(%arg0: i32) -> (i32, i32, i32) {
    %c0_i32 = arith.constant 0 : i32
    %c0_i32_0 = arith.constant 0 : i32
    %c0_i32_1 = arith.constant 0 : i32
    return %arg0, %c0_i32, %c0_i32_0 : i32, i32, i32
  }
}

</mosaic_0001>

<bundles_post_ra>
// kernel: tpu_custom_call.1
= control target key start
LH: loop header
LB: loop body
LE: loop exit
PB: predicated region body
PF: predicated region fallthrough
CT: control target
= control target key end

     0   :  { %7 = vsyncpa [#allocation3], 0  ;;  %s370_s0 = inlined_call_operand.hbm [shape: f32[8,512], index: 0, kind: input, shape index: {}]   ;;  %s371_s1 = inlined_call_operand.hbm [shape: f32[8,512], index: 1, kind: input, shape index: {}]   ;;  %s372_s2 = inlined_call_operand.hbm [shape: f32[1,8,512], index: 2, kind: output, shape index: {}]  }
   0x1   :  { %8 = vsyncpa [#allocation6], 0 }
   0x2   :  { %9 = vsyncpa [#allocation4], 0  ;;  %s263_s9 = smov [#allocation2]   ;;  %s264_s11 = smov [#allocation5]  }
   0x3   :  { %s16_s10 = sshll.u32 %s263_s9, 4  ;;  %s26_s12 = sshll.u32 %s264_s11, 4  ;;  %s17_s10 = int_to_ptr.vmem [resolvable:$true] %s16_s10  ;;  %s27_s12 = int_to_ptr.vmem [resolvable:$true] %s26_s12 }
   0x4   :  { %s191_s15 = scalar_lea.hbm %s370_s0, 512 }
   0x5   :  { %p192_p0 = scmp.ne.s32.totalorder %s370_s0, %s191_s15  ;;  %p195_p1 = scmp.lt.u32.totalorder %s191_s15, %s370_s0 }
   0x7   :  { %p197_p2 = pnand %p195_p1, %p192_p0 }
   0x9   :  { %200 = shalt.err (!%p197_p2)
}
   0xa   :  { %s201_s20 = scalar_lea.vmem %s17_s10, 512  ;;  %p206_p4 = scmp.lt.s32.totalorder %s17_s10, %s17_s10 }
   0xb   :  { %p202_p3 = scmp.ne.s32.totalorder %s17_s10, %s201_s20  ;;  %p207_p5 = scmp.lt.s32.totalorder %s201_s20, %s201_s20 }
   0xd   :  { %p208_p6 = por %p207_p5, %p206_p4 }
   0xf   :  { %p209_p7 = pnand %p208_p6, %p202_p3 }
  0x11   :  { %212 = shalt.err (!%p209_p7)
}
  0x12   :  { %19 = dma.hbm_to_vmem [thread:$0]  %s370_s0, 512, %s17_s10, [#allocation3]  }
  0x13   :  { %s213_s25 = scalar_lea.hbm %s371_s1, 512 }
  0x14   :  { %p214_p8 = scmp.ne.s32.totalorder %s371_s1, %s213_s25  ;;  %p217_p9 = scmp.lt.u32.totalorder %s213_s25, %s371_s1 }
  0x16   :  { %p219_p10 = pnand %p217_p9, %p214_p8 }
  0x18   :  { %222 = shalt.err (!%p219_p10)
}
  0x19   :  { %s223_s30 = scalar_lea.vmem %s27_s12, 512  ;;  %p228_p12 = scmp.lt.s32.totalorder %s27_s12, %s27_s12 }
  0x1a   :  { %p224_p11 = scmp.ne.s32.totalorder %s27_s12, %s223_s30  ;;  %p229_p13 = scmp.lt.s32.totalorder %s223_s30, %s223_s30 }
  0x1c   :  { %p230_p0 = por %p229_p13, %p228_p12 }
  0x1e   :  { %p231_p1 = pnand %p230_p0, %p224_p11 }
  0x20   :  { %234 = shalt.err (!%p231_p1)
}
  0x21   :  { %29 = dma.hbm_to_vmem [thread:$0]  %s371_s1, 512, %s27_s12, [#allocation6]  }
  0x22   :  { %257 = dma.done.wait [#allocation3], 512  }
  0x23   :  { %258 = vsyncadd [#allocation3], 4294966784 }
  0x24   :  { %259 = dma.done.wait [#allocation6], 512  }
  0x25   :  { %260 = vsyncadd [#allocation6], 4294966784  ;;  %v305_v0 = vld [vmem:[#allocation2] sm:$0xff]  ;;  %v307_v1 = vld [vmem:[#allocation2 + $0x8] sm:$0xff]  ;;  %s265_s1 = smov [#allocation7]  }
  0x26   :  { %v44_v2 = vand.u32 2147483647, %v305_v0  ;;  %v45_v3 = vand.u32 2147483647, %v307_v1  ;;  %v311_v4 = vld [vmem:[#allocation2 + $0x10] sm:$0xff]  ;;  %v313_v5 = vld [vmem:[#allocation2 + $0x18] sm:$0xff] }
  0x27   :  { %v46_v7 = vand.u32 2147483647, %v311_v4  ;;  %v47_v9 = vand.u32 2147483647, %v313_v5  ;;  %v96_v31 = vmin.f32 %v305_v0, 0.0  ;;  %vm116_vm0 = vcmp.ge.f32.partialorder %v305_v0, 0.0 }
  0x28   :  { %v48_v6 = vsub.f32 0.0, %v44_v2  ;;  %v49_v8 = vsub.f32 0.0, %v45_v3  ;;  %v97_v34 = vmin.f32 %v307_v1, 0.0  ;;  %vm117_vm2 = vcmp.ge.f32.partialorder %v307_v1, 0.0  ;;  %v40_v2 = vld [vmem:[#allocation5] sm:$0xff]  ;;  %s154_s4 = sshll.u32 %s265_s1, 4  ;;  %s155_s4 = int_to_ptr.vmem [resolvable:$true] %s154_s4 }
  0x29   :  { %v50_v11 = vsub.f32 0.0, %v46_v7  ;;  %v51_v13 = vsub.f32 0.0, %v47_v9  ;;  %v98_v39 = vmin.f32 %v311_v4, 0.0  ;;  %vm118_vm3 = vcmp.ge.f32.partialorder %v311_v4, 0.0  ;;  %s235_s5 = scalar_lea.vmem %s155_s4, 512  ;;  %p240_p3 = scmp.lt.s32.totalorder %s155_s4, %s155_s4 }
  0x2a   :  { %v52_v10 = vmul.f32 1.442695, %v48_v6  ;;  %v54_v12 = vmul.f32 1.442695, %v49_v8  ;;  %v99_v48 = vmin.f32 %v313_v5, 0.0  ;;  %vm119_vm5 = vcmp.ge.f32.partialorder %v313_v5, 0.0  ;;  %p236_p2 = scmp.ne.s32.totalorder %s155_s4, %s235_s5  ;;  %p241_p4 = scmp.lt.s32.totalorder %s235_s5, %s235_s5 }
  0x2b   :  { %v56_v14 = vmul.f32 1.442695, %v50_v11  ;;  %v58_v15 = vmul.f32 1.442695, %v51_v13 }
  0x2c   :  { %167 = vpow2.f32 %v52_v10  ;;  %p242_p5 = por %p241_p4, %p240_p3 }
  0x2d   :  { %169 = vpow2.f32 %v54_v12  ;;  %v41_v12 = vld [vmem:[#allocation5 + $0x8] sm:$0xff] }
  0x2e   :  { %171 = vpow2.f32 %v56_v14  ;;  %p243_p6 = pnand %p242_p5, %p236_p2 }
  0x2f   :  { %173 = vpow2.f32 %v58_v15 }
  0x36   :  { %v168_v16 = vpop.eup %167 }
  0x37   :  { %v170_v17 = vpop.eup %169  ;;  %v60_v18 = vadd.f32 1.0, %v168_v16  ;;  %v63_v23 = vmul.f32 -0.5, %v168_v16  ;;  %v66_v28 = vand.u32 2147483647, %v168_v16 }
  0x38   :  { %v172_v19 = vpop.eup %171  ;;  %v69_v20 = vadd.f32 1.0, %v170_v17  ;;  %v72_v25 = vmul.f32 -0.5, %v170_v17  ;;  %v75_v32 = vand.u32 2147483647, %v170_v17 }
  0x39   :  { %v317_v21 = vpop.eup %173  ;;  %175 = vlog2.f32 %v60_v18  ;;  %v78_v22 = vadd.f32 1.0, %v172_v19  ;;  %v64_v26 = vadd.f32 1.0, %v63_v23  ;;  %v81_v27 = vmul.f32 -0.5, %v172_v19 }
  0x3a   :  { %177 = vrcp.f32 %v60_v18  ;;  %v87_v24 = vadd.f32 1.0, %v317_v21  ;;  %v73_v29 = vadd.f32 1.0, %v72_v25  ;;  %v90_v30 = vmul.f32 -0.5, %v317_v21 }
  0x3b   :  { %179 = vlog2.f32 %v69_v20  ;;  %v65_v33 = vmul.f32 %v168_v16, %v64_v26  ;;  %v82_v35 = vadd.f32 1.0, %v81_v27  ;;  %vm324_vm1 = vcmp.lt.f32.partialorder %v66_v28, 0.0004427343  ;;  %v43_v26 = vld [vmem:[#allocation5 + $0x18] sm:$0xff] }
  0x3c   :  { %181 = vrcp.f32 %v69_v20  ;;  %v84_v38 = vand.u32 2147483647, %v172_v19  ;;  %v74_v42 = vmul.f32 %v170_v17, %v73_v29  ;;  %v91_v43 = vadd.f32 1.0, %v90_v30 }
  0x3d   :  { %183 = vlog2.f32 %v78_v22  ;;  %vm331_vm4 = vcmp.lt.f32.partialorder %v75_v32, 0.0004427343  ;;  %v93_v47 = vand.u32 2147483647, %v317_v21  ;;  %v83_v52 = vmul.f32 %v172_v19, %v82_v35 }
  0x3e   :  { %185 = vrcp.f32 %v78_v22  ;;  %vm342_vm6 = vcmp.lt.f32.partialorder %v84_v38, 0.0004427343  ;;  %v92_v62 = vmul.f32 %v317_v21, %v91_v43 }
  0x3f   :  { %187 = vlog2.f32 %v87_v24  ;;  %vm94_vm7 = vcmp.lt.f32.partialorder %v93_v47, 0.0004427343 }
  0x40   :  { %189 = vrcp.f32 %v87_v24 }
  0x43   :  { %v176_v36 = vpop.eup %175 }
  0x44   :  { %v178_v40 = vpop.eup %177  ;;  %v62_v41 = vmul.f32 0.6931472, %v176_v36 }
  0x45   :  { %v180_v44 = vpop.eup %179  ;;  %v120_v45 = vmul.f32 %v178_v40, %v168_v16 }
  0x46   :  { %v182_v49 = vpop.eup %181  ;;  %v68_v50 = vsel %vm324_vm1, %v65_v33, %v62_v41  ;;  %v71_v51 = vmul.f32 0.6931472, %v180_v44 }
  0x47   :  { %v184_v53 = vpop.eup %183  ;;  %v100_v54 = vsub.f32 %v96_v31, %v68_v50  ;;  %v124_v55 = vsel %vm116_vm0, %v120_v45, %v178_v40  ;;  %v121_v56 = vmul.f32 %v182_v49, %v170_v17 }
  0x48   :  { %v186_v58 = vpop.eup %185  ;;  %v128_v59 = vmul.f32 %v124_v55, %v124_v55  ;;  %v77_v60 = vsel %vm331_vm4, %v74_v42, %v71_v51  ;;  %v80_v61 = vmul.f32 0.6931472, %v184_v53 }
  0x49   :  { %v188_v63 = vpop.eup %187  ;;  %v101_v3 = vsub.f32 %v97_v34, %v77_v60  ;;  %v125_v0 = vsel %vm117_vm2, %v121_v56, %v182_v49  ;;  %v122_v6 = vmul.f32 %v186_v58, %v172_v19  ;;  %v42_v19 = vld [vmem:[#allocation5 + $0x10] sm:$0xff] }
  0x4a   :  { %v190_v7 = vpop.eup %189  ;;  %v132_v8 = vmul.f32 %v128_v59, %v100_v54  ;;  %v129_v9 = vmul.f32 %v125_v0, %v125_v0  ;;  %v86_v10 = vsel %vm342_vm6, %v83_v52, %v80_v61  ;;  %v89_v11 = vmul.f32 0.6931472, %v188_v63 }
  0x4b   :  { %v102_v13 = vsub.f32 %v98_v39, %v86_v10  ;;  %v126_v14 = vsel %vm118_vm3, %v122_v6, %v186_v58  ;;  %v123_v15 = vmul.f32 %v190_v7, %v317_v21 }
  0x4c   :  { %v136_v16 = vmul.f32 %v132_v8, %v40_v2  ;;  %v133_v17 = vmul.f32 %v129_v9, %v101_v3  ;;  %v130_v1 = vmul.f32 %v126_v14, %v126_v14  ;;  %v95_v18 = vsel %vm94_vm7, %v92_v62, %v89_v11 }
  0x4d   :  { %v103_v20 = vsub.f32 %v99_v48, %v95_v18  ;;  %v127_v22 = vsel %vm119_vm5, %v123_v15, %v190_v7 }
  0x4e   :  { %144 = vst [vmem:[#allocation7] sm:$0xff] %v136_v16  ;;  %v137_v23 = vmul.f32 %v133_v17, %v41_v12  ;;  %v134_v24 = vmul.f32 %v130_v1, %v102_v13  ;;  %v131_v25 = vmul.f32 %v127_v22, %v127_v22 }
  0x50   :  { %145 = vst [vmem:[#allocation7 + $0x8] sm:$0xff] %v137_v23  ;;  %v138_v4 = vmul.f32 %v134_v24, %v42_v19  ;;  %v135_v27 = vmul.f32 %v131_v25, %v103_v20 }
  0x52   :  { %146 = vst [vmem:[#allocation7 + $0x10] sm:$0xff] %v138_v4  ;;  %v139_v21 = vmul.f32 %v135_v27, %v43_v26 }
  0x54   :  { %147 = vst [vmem:[#allocation7 + $0x18] sm:$0xff] %v139_v21 }
  0x55   :  { %246 = shalt.err (!%p243_p6)
}
  0x56   :  { %s247_s8 = scalar_lea.hbm %s372_s2, 512 }
  0x57   :  { %p248_p7 = scmp.ne.s32.totalorder %s372_s2, %s247_s8  ;;  %p251_p8 = scmp.lt.u32.totalorder %s247_s8, %s372_s2 }
  0x59   :  { %p253_p9 = pnand %p251_p8, %p248_p7 }
  0x5b   :  { %256 = shalt.err (!%p253_p9)
}
  0x5c   :  { %157 = dma.vmem_to_hbm [thread:$0]  %s155_s4, 512, %s372_s2, [#allocation4]  }
  0x5d   :  { %261 = dma.done.wait [#allocation4], 512  }
  0x5e   :  { %262 = vsyncadd [#allocation4], 4294966784 }
  0x5f   :  { %161 = vsyncpa [#allocation3], 1 }
  0x60   :  { %162 = vsyncpa [#allocation6], 1 }
  0x61   :  { %163 = vsyncpa [#allocation4], 1 }

</bundles_post_ra>
